<compile_context>
chip_gen: v6e
topology: v6e:2x2x1
jax: 0.10.0
libtpu: 0.0.40
codegen_flags: <defaults>
</compile_context>

<pallas_src>
import functools

import jax
import jax.numpy as jnp
from jax.experimental import pallas as pl
from jax.experimental.pallas import tpu as pltpu

ALPHA = 1.0
GAMMA = 2.0
LANES = 128
SUBLANES = 8
TILE = SUBLANES * LANES          # 1024 elements = one f32 vreg
MAX_BLOCK_ROWS = 8192            # (8192, 128) f32 = 4 MiB per input per pipeline buffer


def _focal_weight(one_minus_pt, gamma):
    """(1 - pt) ** gamma, specialized to repeated multiplies for small integer gamma."""
    g = float(gamma)
    if g == int(g) and 0 <= int(g) <= 8:
        n = int(g)
        if n == 0:
            return jnp.ones_like(one_minus_pt)
        w = one_minus_pt
        for _ in range(n - 1):
            w = w * one_minus_pt
        return w
    # Generic float exponent: guard the log(0)/negative-base hazard of pow.
    safe = jnp.maximum(one_minus_pt, jnp.finfo(jnp.float32).tiny)
    return jnp.where(one_minus_pt > 0, safe ** g, 0.0)


def _focal_elems(x, t, alpha, gamma):
    """Per-element focal loss in f32 (numerically stable BCE-with-logits)."""
    x = x.astype(jnp.float32)
    t = t.astype(jnp.float32)
    # bce = max(x, 0) - x*t + log1p(exp(-|x|))   (matches torch BCEWithLogitsLoss)
    bce = jnp.maximum(x, 0.0) - x * t + jnp.log1p(jnp.exp(-jnp.abs(x)))
    pt = jnp.exp(-bce)
    return alpha * _focal_weight(1.0 - pt, gamma) * bce


def _fold_to_vreg(f, block_rows):
    """(block_rows, 128) -> (8, 128) partial sum.

    Two-stage reduce (8 independent add chains, then a depth-7 fold) so the per-block
    reduction is not one ~block_rows/8-deep dependent VALU chain.
    """
    if block_rows >= 64:
        g = f.reshape(block_rows // 64, SUBLANES, SUBLANES, LANES)
        return jnp.sum(jnp.sum(g, axis=0), axis=0)
    return jnp.sum(f.reshape(block_rows // SUBLANES, SUBLANES, LANES), axis=0)


def _focal_loss_kernel(x_ref, t_ref, o_ref, *, alpha, gamma, num_cores, bpc,
                       nblocks, block_rows, tail_rows, has_dup):
    """One (block_rows, 128) tile -> accumulate into a resident (1, 8, 128) partial."""
    if num_cores > 1:
        p = pl.program_id(0)           # core axis
        i = pl.program_id(1)           # reduction axis
    else:
        p = 0
        i = pl.program_id(0)
    blk = p * bpc + i                  # global block id

    @pl.when(i == 0)
    def _():
        o_ref[...] = jnp.zeros_like(o_ref)

    def _accum(mask_tail):
        f = _focal_elems(x_ref[...], t_ref[...], alpha, gamma)
        if mask_tail:
            # Last block overhangs the array: zero rows past the end (the overhang
            # region of the VMEM buffer holds garbage -> NaNs are discarded by where).
            rid = jax.lax.broadcasted_iota(jnp.int32, f.shape, 0)
            f = jnp.where(rid < tail_rows, f, 0.0)
        o_ref[...] += _fold_to_vreg(f, block_rows)[None, :, :]

    if tail_rows != 0:
        # Interior blocks: unmasked fast path.
        @pl.when(blk < nblocks - 1)
        def _():
            _accum(False)

        # Tail block: masked.
        @pl.when(blk == nblocks - 1)
        def _():
            _accum(True)
        # blk >= nblocks (clamped duplicate on the short core): skipped entirely.
    elif has_dup:
        @pl.when(blk < nblocks)
        def _():
            _accum(False)
    else:
        _accum(False)


def _tensorcore_split():
    """(num_cores, leading-axis semantics) for the current chip generation."""
    try:
        kind = jax.devices()[0].device_kind.lower()
    except Exception:
        return 1, None
    if "v7" in kind:
        # v7x: 2 independent TensorCores per chip; CORE_PARALLEL shards the axis.
        return 2, pltpu.CORE_PARALLEL
    if "v4" in kind or "v5p" in kind:
        # Megacore chips: classic "parallel" grid-axis sharding across both cores.
        return 2, pltpu.PARALLEL
    # v2/v3/v5e/v6e expose a single TensorCore per device: no core axis at all.
    return 1, None


def _focal_sum_kernel_call(x2d, t2d, alpha, gamma):
    """Sum of per-element focal loss over a (rows, 128) array (rows % 8 == 0)."""
    rows = x2d.shape[0]
    block_rows = min(MAX_BLOCK_ROWS, rows)
    nblocks = pl.cdiv(rows, block_rows)

    num_cores, core_sem = _tensorcore_split()
    num_cores = min(num_cores, nblocks)
    bpc = pl.cdiv(nblocks, num_cores)
    has_dup = (num_cores * bpc != nblocks)

    tail_rows = rows - (nblocks - 1) * block_rows   # static; multiple of 8
    if tail_rows == block_rows:
        tail_rows = 0                               # last block is full -> no mask

    kernel = functools.partial(
        _focal_loss_kernel,
        alpha=float(alpha), gamma=float(gamma),
        num_cores=num_cores, bpc=bpc, nblocks=nblocks,
        block_rows=block_rows, tail_rows=tail_rows, has_dup=has_dup,
    )

    if num_cores > 1:
        grid = (num_cores, bpc)
        dims = (core_sem, pltpu.ARBITRARY)
        out_idx = lambda p, i: (p, 0, 0)
        if has_dup:
            # Clamp trailing out-of-range blocks; their accumulation is skipped in-kernel.
            in_idx = lambda p, i: (jnp.minimum(p * bpc + i, nblocks - 1), 0)
        else:
            in_idx = lambda p, i: (p * bpc + i, 0)
    else:
        grid = (nblocks,)
        dims = (pltpu.ARBITRARY,)
        out_idx = lambda i: (0, 0, 0)
        in_idx = lambda i: (i, 0)

    partials = pl.pallas_call(
        kernel,
        out_shape=jax.ShapeDtypeStruct((num_cores, SUBLANES, LANES), jnp.float32),
        grid_spec=pltpu.PrefetchScalarGridSpec(
            num_scalar_prefetch=0,
            grid=grid,
            in_specs=[
                pl.BlockSpec((block_rows, LANES), in_idx),
                pl.BlockSpec((block_rows, LANES), in_idx),
            ],
            out_specs=pl.BlockSpec((1, SUBLANES, LANES), out_idx),
        ),
        compiler_params=pltpu.CompilerParams(
            dimension_semantics=dims,
            vmem_limit_bytes=32 * 1024 * 1024,
        ),
    )(x2d, t2d)

    return jnp.sum(partials)   # tiny (num_cores*8*128) final reduce in the wrapper


def focal_loss(inputs, targets, alpha=ALPHA, gamma=GAMMA, reduction="mean"):
    """Focal loss matching the PyTorch module's forward (default reduction='mean').

    Inputs may be bf16 (recommended for HBM-bound speed): no wrapper-side cast is
    done; the cast to f32 happens in VMEM inside the kernel.
    """
    assert inputs.shape == targets.shape
    total = inputs.size

    flat_x = inputs.reshape(-1)     # no dtype cast, no padding: zero extra HBM copies
    flat_t = targets.reshape(-1)

    main = (total // TILE) * TILE   # largest prefix that reshapes freely to (rows, 128)
    s = jnp.float32(0.0)

    if main:
        rows = main // LANES        # multiple of 8
        # When main == total the slice is the full array (free); otherwise it is a
        # prefix slice — still no concatenate / padded copy of both inputs.
        x2d = flat_x[:main].reshape(rows, LANES)
        t2d = flat_t[:main].reshape(rows, LANES)
        s = s + _focal_sum_kernel_call(x2d, t2d, alpha, gamma)

    if main != total:
        # Ragged tail (< 1024 elements): plain jnp, negligible cost, no padding.
        s = s + jnp.sum(_focal_elems(flat_x[main:], flat_t[main:],
                                     float(alpha), float(gamma)))

    if reduction == "mean":
        return s / jnp.float32(total)
    if reduction == "sum":
        return s
    # TODO(synk): reduction='none' (elementwise output) not implemented in this fused-reduction kernel.
    raise NotImplementedError("reduction='none' is not supported by this kernel")


def focal_loss_ref(inputs, targets, alpha=ALPHA, gamma=GAMMA):
    return jnp.mean(_focal_elems(inputs, targets, float(alpha), float(gamma)))


if __name__ == "__main__":
    key = jax.random.PRNGKey(0)
    k1, k2 = jax.random.split(key)
    # Shapes consistent with a typical NCHW logit map: (B=2, C=4, H=16, W=16)
    x = jax.random.normal(k1, (2, 4, 16, 16), dtype=jnp.float32)
    targets = jax.random.bernoulli(k2, 0.5, (2, 4, 16, 16)).astype(jnp.float32)

    out = jax.block_until_ready(focal_loss(x, targets))
    ref = jax.block_until_ready(focal_loss_ref(x, targets))

    assert jnp.allclose(out, ref, rtol=1e-5, atol=1e-6), (out, ref)
    print("KERNEL_OK")
</pallas_src>

<mosaic_0001>
module attributes {stable_mosaic.version = 11 : i64} {
  func.func @_focal_loss_kernel(%arg0: i32, %arg1: memref<16x128xf32, #tpu.memory_space<vmem>>, %arg2: memref<16x128xf32, #tpu.memory_space<vmem>>, %arg3: memref<1x8x128xf32, #tpu.memory_space<vmem>>) attributes {dimension_semantics = [#tpu.dimension_semantics<arbitrary>], iteration_bounds = array<i64: 1>, scalar_prefetch = 0 : i64, scratch_operands = 0 : i64, tpu.core_type = #tpu.core_type<tc>, window_params = [{transform_indices = @transform_0, window_bounds = array<i64: 16, 128>}, {transform_indices = @transform_1, window_bounds = array<i64: 16, 128>}, {pipeline_mode = #tpu.pipeline_mode<synchronous>, transform_indices = @transform_2, window_bounds = array<i64: 1, 8, 128>}]} {
    %c0_i32 = arith.constant 0 : i32
    %0 = arith.cmpi eq, %arg0, %c0_i32 : i32
    %1 = arith.extui %0 : i1 to i32
    %c0_i32_0 = arith.constant 0 : i32
    %2 = arith.cmpi ne, %1, %c0_i32_0 : i32
    scf.if %2 {
      %cst_15 = arith.constant 0.000000e+00 : f32
      %30 = vector.broadcast %cst_15 : f32 to vector<1x8x128xf32>
      %c0_16 = arith.constant 0 : index
      %c0_17 = arith.constant 0 : index
      %c0_18 = arith.constant 0 : index
      %31 = vector.load %arg3[%c0_16, %c0_17, %c0_18] : memref<1x8x128xf32, #tpu.memory_space<vmem>>, vector<1x8x128xf32>
      tpu.vector_store %arg3[%c0_16, %c0_17, %c0_18], %30 {strides = array<i32>} : memref<1x8x128xf32, #tpu.memory_space<vmem>>, vector<1x8x128xf32>,
    } else {
    }
    %c0 = arith.constant 0 : index
    %c0_1 = arith.constant 0 : index
    %3 = vector.load %arg1[%c0, %c0_1] : memref<16x128xf32, #tpu.memory_space<vmem>>, vector<16x128xf32>
    %c0_2 = arith.constant 0 : index
    %c0_3 = arith.constant 0 : index
    %4 = vector.load %arg2[%c0_2, %c0_3] : memref<16x128xf32, #tpu.memory_space<vmem>>, vector<16x128xf32>
    %cst = arith.constant 0.000000e+00 : f32
    %5 = vector.broadcast %cst : f32 to vector<16x128xf32>
    %6 = arith.maximumf %3, %5 : vector<16x128xf32>
    %7 = arith.mulf %3, %4 : vector<16x128xf32>
    %8 = arith.subf %6, %7 : vector<16x128xf32>
    %9 = math.absf %3 : vector<16x128xf32>
    %cst_4 = arith.constant 0.000000e+00 : f32
    %10 = vector.broadcast %cst_4 : f32 to vector<16x128xf32>
    %11 = arith.subf %10, %9 : vector<16x128xf32>
    %12 = math.exp %11 : vector<16x128xf32>
    %13 = math.log1p %12 : vector<16x128xf32>
    %14 = arith.addf %8, %13 : vector<16x128xf32>
    %cst_5 = arith.constant 0.000000e+00 : f32
    %15 = vector.broadcast %cst_5 : f32 to vector<16x128xf32>
    %16 = arith.subf %15, %14 : vector<16x128xf32>
    %17 = math.exp %16 : vector<16x128xf32>
    %cst_6 = arith.constant 1.000000e+00 : f32
    %18 = vector.broadcast %cst_6 : f32 to vector<16x128xf32>
    %19 = arith.subf %18, %17 : vector<16x128xf32>
    %20 = arith.mulf %19, %19 : vector<16x128xf32>
    %cst_7 = arith.constant 1.000000e+00 : f32
    %21 = vector.broadcast %cst_7 : f32 to vector<16x128xf32>
    %22 = arith.mulf %21, %20 : vector<16x128xf32>
    %23 = arith.mulf %22, %14 : vector<16x128xf32>
    %c0_8 = arith.constant 0 : index
    %c0_9 = arith.constant 0 : index
    %c0_10 = arith.constant 0 : index
    %24 = vector.load %arg3[%c0_8, %c0_9, %c0_10] : memref<1x8x128xf32, #tpu.memory_space<vmem>>, vector<1x8x128xf32>
    %25 = vector.shape_cast %23 : vector<16x128xf32> to vector<2x8x128xf32>
    %cst_11 = arith.constant dense<0.000000e+00> : vector<8x128xf32>
    %26 = vector.multi_reduction <add>, %25, %cst_11 [0] : vector<2x8x128xf32> to vector<8x128xf32>
    %27 = vector.shape_cast %26 : vector<8x128xf32> to vector<1x8x128xf32>
    %28 = arith.addf %24, %27 : vector<1x8x128xf32>
    %c0_12 = arith.constant 0 : index
    %c0_13 = arith.constant 0 : index
    %c0_14 = arith.constant 0 : index
    %29 = vector.load %arg3[%c0_12, %c0_13, %c0_14] : memref<1x8x128xf32, #tpu.memory_space<vmem>>, vector<1x8x128xf32>
    tpu.vector_store %arg3[%c0_12, %c0_13, %c0_14], %28 {strides = array<i32>} : memref<1x8x128xf32, #tpu.memory_space<vmem>>, vector<1x8x128xf32>,
    return
  }
  func.func @transform_0(%arg0: i32) -> (i32, i32) {
    %c0_i32 = arith.constant 0 : i32
    %c0_i32_0 = arith.constant 0 : i32
    return %arg0, %c0_i32 : i32, i32
  }
  func.func @transform_1(%arg0: i32) -> (i32, i32) {
    %c0_i32 = arith.constant 0 : i32
    %c0_i32_0 = arith.constant 0 : i32
    return %arg0, %c0_i32 : i32, i32
  }
  func.func @transform_2(%arg0: i32) -> (i32, i32, i32) {
    %c0_i32 = arith.constant 0 : i32
    %c0_i32_0 = arith.constant 0 : i32
    %c0_i32_1 = arith.constant 0 : i32
    %c0_i32_2 = arith.constant 0 : i32
    return %c0_i32, %c0_i32_0, %c0_i32_1 : i32, i32, i32
  }
}

</mosaic_0001>

<bundles_post_ra>
// kernel: tpu_custom_call.1
= control target key start
LH: loop header
LB: loop body
LE: loop exit
PB: predicated region body
PF: predicated region fallthrough
CT: control target
= control target key end

     0   :  { %7 = vsyncpa [#allocation3], 0  ;;  %s228_s0 = inlined_call_operand.hbm [shape: f32[16,128], index: 0, kind: input, shape index: {}]   ;;  %s229_s1 = inlined_call_operand.hbm [shape: f32[16,128], index: 1, kind: input, shape index: {}]   ;;  %s230_s2 = inlined_call_operand.hbm [shape: f32[1,8,128], index: 2, kind: output, shape index: {}]  }
   0x1   :  { %8 = vsyncpa [#allocation6], 0 }
   0x2   :  { %9 = vsyncpa [#allocation4], 0  ;;  %s199_s9 = smov [#allocation2]  }
   0x3   :  { %s15_s10 = sshll.u32 %s199_s9, 4  ;;  %s16_s10 = int_to_ptr.vmem [resolvable:$true] %s15_s10 }
   0x4   :  { %s141_s11 = scalar_lea.vmem %s16_s10, 256  ;;  %p146_p1 = scmp.lt.s32.totalorder %s16_s10, %s16_s10 }
   0x5   :  { %p142_p0 = scmp.ne.s32.totalorder %s16_s10, %s141_s11  ;;  %p147_p2 = scmp.lt.s32.totalorder %s141_s11, %s141_s11 }
   0x7   :  { %p148_p3 = por %p147_p2, %p146_p1 }
   0x9   :  { %p149_p4 = pnand %p148_p3, %p142_p0 }
   0xb   :  { %152 = shalt.err (!%p149_p4)
}
   0xc   :  { %s200_s12 = smov 128   ;;  %s201_s13 = smov 8  }
   0xd   :  { %21 = dma.hbm_to_vmem [thread:$0]  %s228_s0, 256, %s16_s10, [#allocation3], %s200_s12, %s200_s12, %s201_s13  }
   0xe   :  { %s202_s16 = smov [#allocation5]  }
   0xf   :  { %s27_s17 = sshll.u32 %s202_s16, 4  ;;  %s28_s17 = int_to_ptr.vmem [resolvable:$true] %s27_s17 }
  0x10   :  { %s161_s18 = scalar_lea.vmem %s28_s17, 256  ;;  %p166_p6 = scmp.lt.s32.totalorder %s28_s17, %s28_s17 }
  0x11   :  { %p162_p5 = scmp.ne.s32.totalorder %s28_s17, %s161_s18  ;;  %p167_p7 = scmp.lt.s32.totalorder %s161_s18, %s161_s18 }
  0x13   :  { %p168_p8 = por %p167_p7, %p166_p6 }
  0x15   :  { %p169_p9 = pnand %p168_p8, %p162_p5 }
  0x17   :  { %172 = shalt.err (!%p169_p9)
}
  0x18   :  { %33 = dma.hbm_to_vmem [thread:$0]  %s229_s1, 256, %s28_s17, [#allocation6], %s200_s12, %s200_s12, %s201_s13  }
  0x19   :  { %193 = dma.done.wait [#allocation3], 256  }
  0x1a   :  { %194 = vsyncadd [#allocation3], 4294967040 }
  0x1b   :  { %195 = dma.done.wait [#allocation6], 256  }
  0x1c   :  { %196 = vsyncadd [#allocation6], 4294967040  ;;  %v45_v0 = vld [vmem:[#allocation2] sm:$0xff]  ;;  %v46_v1 = vld [vmem:[#allocation2 + $0x8] sm:$0xff]  ;;  %s203_s0 = smov [#allocation7]  }
  0x1d   :  { %v55_v2 = vand.u32 2147483647, %v45_v0  ;;  %v56_v3 = vand.u32 2147483647, %v46_v1  ;;  %v47_v14 = vld [vmem:[#allocation5] sm:$0xff]  ;;  %v48_v15 = vld [vmem:[#allocation5 + $0x8] sm:$0xff] }
  0x1e   :  { %v49_v17 = vmax.f32 %v45_v0, 0.0  ;;  %v51_v18 = vmul.f32 %v47_v14, %v45_v0  ;;  %v50_v21 = vmax.f32 %v46_v1, 0.0  ;;  %v52_v22 = vmul.f32 %v48_v15, %v46_v1  ;;  %s105_s1 = sshll.u32 %s203_s0, 4  ;;  %s106_s1 = int_to_ptr.vmem [resolvable:$true] %s105_s1 }
  0x1f   :  { %v57_v4 = vsub.f32 0.0, %v55_v2  ;;  %v58_v5 = vsub.f32 0.0, %v56_v3  ;;  %s173_s21 = scalar_lea.vmem %s106_s1, 128  ;;  %p178_p11 = scmp.lt.s32.totalorder %s106_s1, %s106_s1 }
  0x20   :  { %v53_v26 = vsub.f32 %v49_v17, %v51_v18  ;;  %v54_v29 = vsub.f32 %v50_v21, %v52_v22  ;;  %p174_p10 = scmp.ne.s32.totalorder %s106_s1, %s173_s21  ;;  %p179_p12 = scmp.lt.s32.totalorder %s173_s21, %s173_s21 }
  0x21   :  { %v59_v6 = vmul.f32 1.442695, %v57_v4  ;;  %v61_v7 = vmul.f32 1.442695, %v58_v5 }
  0x22   :  { %p180_p13 = por %p179_p12, %p178_p11 }
  0x23   :  { %121 = vpow2.f32 %v59_v6 }
  0x24   :  { %123 = vpow2.f32 %v61_v7  ;;  %p181_p0 = pnand %p180_p13, %p174_p10 }
  0x30   :  { %v122_v8 = vpop.eup %121 }
  0x31   :  { %v124_v9 = vpop.eup %123  ;;  %v63_v10 = vadd.f32 1.0, %v122_v8  ;;  %v66_v12 = vmul.f32 -0.5, %v122_v8  ;;  %v69_v19 = vand.u32 2147483647, %v122_v8 }
  0x32   :  { %v72_v11 = vadd.f32 1.0, %v124_v9  ;;  %v75_v13 = vmul.f32 -0.5, %v124_v9  ;;  %v78_v23 = vand.u32 2147483647, %v124_v9 }
  0x33   :  { %125 = vlog2.f32 %v63_v10  ;;  %v67_v16 = vadd.f32 1.0, %v66_v12  ;;  %vm70_vm0 = vcmp.lt.f32.partialorder %v69_v19, 0.0004427343 }
  0x34   :  { %127 = vlog2.f32 %v72_v11  ;;  %v76_v20 = vadd.f32 1.0, %v75_v13  ;;  %vm79_vm1 = vcmp.lt.f32.partialorder %v78_v23, 0.0004427343 }
  0x35   :  { %v68_v24 = vmul.f32 %v122_v8, %v67_v16 }
  0x36   :  { %v77_v27 = vmul.f32 %v124_v9, %v76_v20 }
  0x40   :  { %v126_v25 = vpop.eup %125 }
  0x41   :  { %v128_v28 = vpop.eup %127  ;;  %v65_v30 = vmul.f32 0.6931472, %v126_v25 }
  0x42   :  { %v74_v31 = vmul.f32 0.6931472, %v128_v28 }
  0x43   :  { %v71_v32 = vsel %vm70_vm0, %v68_v24, %v65_v30 }
  0x44   :  { %v80_v33 = vsel %vm79_vm1, %v77_v27, %v74_v31  ;;  %v81_v34 = vadd.f32 %v71_v32, %v53_v26 }
  0x45   :  { %v82_v35 = vadd.f32 %v80_v33, %v54_v29 }
  0x46   :  { %v83_v36 = vsub.f32 0.0, %v81_v34 }
  0x47   :  { %v84_v37 = vsub.f32 0.0, %v82_v35 }
  0x48   :  { %v85_v38 = vmul.f32 1.442695, %v83_v36 }
  0x49   :  { %v87_v39 = vmul.f32 1.442695, %v84_v37 }
  0x4a   :  { %129 = vpow2.f32 %v85_v38 }
  0x4b   :  { %131 = vpow2.f32 %v87_v39 }
  0x57   :  { %v130_v40 = vpop.eup %129 }
  0x58   :  { %v132_v41 = vpop.eup %131  ;;  %v89_v42 = vsub.f32 1.0, %v130_v40 }
  0x59   :  { %v90_v43 = vsub.f32 1.0, %v132_v41 }
  0x5a   :  { %v91_v44 = vmul.f32 %v89_v42, %v89_v42 }
  0x5b   :  { %v92_v45 = vmul.f32 %v90_v43, %v90_v43 }
  0x5c   :  { %v93_v46 = vmul.f32 %v91_v44, %v81_v34 }
  0x5d   :  { %v94_v47 = vmul.f32 %v92_v45, %v82_v35 }
  0x5f   :  { %v96_v48 = vadd.f32 %v94_v47, %v93_v46 }
  0x61   :  { %98 = vst [vmem:[#allocation7] sm:$0xff] %v96_v48 }
  0x62   :  { %184 = shalt.err (!%p181_p0)
}
  0x63   :  { %108 = dma.vmem_to_hbm [thread:$0]  %s106_s1, 128, %s230_s2, [#allocation4]  }
  0x64   :  { %197 = dma.done.wait [#allocation4], 128  }
  0x65   :  { %198 = vsyncadd [#allocation4], 4294967168 }
  0x66   :  { %112 = vsyncpa [#allocation3], 1 }
  0x67   :  { %113 = vsyncpa [#allocation6], 1 }
  0x68   :  { %114 = vsyncpa [#allocation4], 1 }

</bundles_post_ra>
